<compile_context>
chip_gen: v5e
topology: v5e:2x2
jax: 0.10.0
libtpu: 0.0.40
codegen_flags: <defaults>
</compile_context>

<pallas_src>
import functools

import jax
import jax.numpy as jnp
from jax import lax
from jax.experimental import pallas as pl
from jax.experimental.pallas import tpu as pltpu
import numpy as np


def _round_up8(n):
    return ((n + 7) // 8) * 8


def _make_kernel(T, B, D, H, H2, C, off_b, off_w1, off_b1, off_w2, off_b2):
    """Builds the fused LSTM-classifier kernel for static shapes/offsets."""

    def kernel(x_ref, wrec_ref, mlp_ref, out_ref):
        # x_ref    : (T*B, D)     time-major, flattened over (t, b)
        # wrec_ref : (D+H, 4H)    rows [0:D) = W_ih^T, rows [D:D+H) = W_hh^T
        # mlp_ref  : (R, Wc)      row-aligned pack: b, W1^T, b1, W2^T, b2
        # out_ref  : (B, C)       logits
        wih = wrec_ref[0:D, :]                      # (D, 4H)
        whh = wrec_ref[D:D + H, :]                  # (H, 4H)
        b = mlp_ref[off_b:off_b + 1, 0:4 * H]       # (1, 4H)

        # Hoisted input projection for all timesteps in one MXU call.
        xg = jnp.dot(x_ref[...], wih,
                     preferred_element_type=jnp.float32) + b   # (T*B, 4H)

        # Full-vreg gate activation: sigmoid everywhere, tanh on the g lanes.
        lane = lax.broadcasted_iota(jnp.int32, (B, 4 * H), 1)
        g_mask = (lane >= 2 * H) & (lane < 3 * H)

        def activate(gates):
            act = jnp.where(g_mask, jnp.tanh(gates), jax.nn.sigmoid(gates))
            return (act[:, 0:H], act[:, H:2 * H],
                    act[:, 2 * H:3 * H], act[:, 3 * H:4 * H])

        # Peeled t = 0: h0 = c0 = 0, so gates are just xg[0:B] (bias included).
        i, f, g, o = activate(xg[0:B, :])
        c = i * g
        h = o * jnp.tanh(c)

        # Remaining steps fully unrolled (static Python loop, T is tiny);
        # only the serial h @ W_hh matmul stays on the critical path.
        for t in range(1, T):
            gates = xg[t * B:(t + 1) * B, :] + jnp.dot(
                h, whh, preferred_element_type=jnp.float32)
            i, f, g, o = activate(gates)
            c = f * c + i * g
            h = o * jnp.tanh(c)

        # hidden1 = relu(dropout(Linear(h_last)))  -- dropout identity in eval.
        w1 = mlp_ref[off_w1:off_w1 + H, 0:H2]       # (H, H2)
        b1 = mlp_ref[off_b1:off_b1 + 1, 0:H2]       # (1, H2)
        w2 = mlp_ref[off_w2:off_w2 + H2, 0:C]       # (H2, C)
        b2 = mlp_ref[off_b2:off_b2 + 1, 0:C]        # (1, C)

        hidden1 = jnp.maximum(
            jnp.dot(h, w1, preferred_element_type=jnp.float32) + b1, 0.0)
        out_ref[...] = (jnp.dot(hidden1, w2,
                                preferred_element_type=jnp.float32) + b2)

    return kernel


def prepare_params(params):
    """One-time (parameter-load-time) packing: transposes, bias fold, DMA packing."""
    w_ih, w_hh, b_ih, b_hh, w1, b1, w2, b2 = params
    H = w_hh.shape[1]
    D = w_ih.shape[1]
    H2 = w1.shape[0]
    C = w2.shape[0]

    # Recurrent weights: one contiguous (D+H, 4H) buffer.
    wrec = jnp.concatenate([jnp.transpose(w_ih), jnp.transpose(w_hh)], axis=0)

    # Small MLP operands packed into one (R, Wc) buffer, rows 8-aligned.
    Wc = max(4 * H, H2, C)
    off_b = 0
    off_w1 = off_b + _round_up8(1)
    off_b1 = off_w1 + _round_up8(H)
    off_w2 = off_b1 + _round_up8(1)
    off_b2 = off_w2 + _round_up8(H2)
    R = off_b2 + _round_up8(1)

    pack = jnp.zeros((R, Wc), jnp.float32)
    pack = pack.at[off_b, :4 * H].set(b_ih + b_hh)
    pack = pack.at[off_w1:off_w1 + H, :H2].set(jnp.transpose(w1))
    pack = pack.at[off_b1, :H2].set(b1)
    pack = pack.at[off_w2:off_w2 + H2, :C].set(jnp.transpose(w2))
    pack = pack.at[off_b2, :C].set(b2)

    dims = (D, H, H2, C, off_b, off_w1, off_b1, off_w2, off_b2)
    return wrec, pack, dims


def lstm_classifier_forward(sequence, prepared):
    """sequence: (batch, seq, input_dim) float32 (PyTorch batch_first layout)."""
    wrec, mlp_pack, dims = prepared
    D, H, H2, C, off_b, off_w1, off_b1, off_w2, off_b2 = dims
    B, T, _ = sequence.shape

    # Per-call glue: only the sequence layout change lives here.
    x_flat = jnp.transpose(sequence, (1, 0, 2)).reshape(T * B, D)  # (T*B, D)

    kernel = _make_kernel(T, B, D, H, H2, C,
                          off_b, off_w1, off_b1, off_w2, off_b2)

    # Everything is a few KB: pass full arrays resident in VMEM, no grid.
    # TODO(synk): if T/B/H ever scale up, move the time axis to a grid
    # dimension with h/c in VMEM scratch and add a parallel batch grid (v7x).
    out = pl.pallas_call(
        kernel,
        out_shape=jax.ShapeDtypeStruct((B, C), jnp.float32),
        in_specs=[pl.BlockSpec(memory_space=pltpu.MemorySpace.VMEM)] * 3,
        out_specs=pl.BlockSpec(memory_space=pltpu.MemorySpace.VMEM),
    )(x_flat, wrec, mlp_pack)
    return out


def reference_forward(sequence, params):
    """Pure-JAX reference implementing the exact PyTorch semantics (eval mode)."""
    w_ih, w_hh, b_ih, b_hh, w1, b1, w2, b2 = params
    B, T, D = sequence.shape
    H = w_hh.shape[1]
    h = jnp.zeros((B, H), jnp.float32)
    c = jnp.zeros((B, H), jnp.float32)
    for t in range(T):
        x_t = sequence[:, t, :]
        gates = x_t @ w_ih.T + b_ih + h @ w_hh.T + b_hh
        i = jax.nn.sigmoid(gates[:, 0 * H:1 * H])
        f = jax.nn.sigmoid(gates[:, 1 * H:2 * H])
        g = jnp.tanh(gates[:, 2 * H:3 * H])
        o = jax.nn.sigmoid(gates[:, 3 * H:4 * H])
        c = f * c + i * g
        h = o * jnp.tanh(c)
    hidden1 = jax.nn.relu(h @ w1.T + b1)   # dropout = identity in eval mode
    return hidden1 @ w2.T + b2


def init_params(key, input_dim, hidden_dims, n_class):
    """Deterministic init mimicking the PyTorch module's parameter shapes."""
    H, H2 = hidden_dims
    ks = jax.random.split(key, 8)
    s = 1.0 / np.sqrt(H)
    w_ih = jax.random.uniform(ks[0], (4 * H, input_dim), jnp.float32, -s, s)
    w_hh = jax.random.uniform(ks[1], (4 * H, H), jnp.float32, -s, s)
    b_ih = jax.random.uniform(ks[2], (4 * H,), jnp.float32, -s, s)
    b_hh = jax.random.uniform(ks[3], (4 * H,), jnp.float32, -s, s)
    s1 = 1.0 / np.sqrt(H)
    w1 = jax.random.uniform(ks[4], (H2, H), jnp.float32, -s1, s1)
    b1 = jax.random.uniform(ks[5], (H2,), jnp.float32, -s1, s1)
    s2 = 1.0 / np.sqrt(H2)
    w2 = jax.random.uniform(ks[6], (n_class, H2), jnp.float32, -s2, s2)
    b2 = jax.random.uniform(ks[7], (n_class,), jnp.float32, -s2, s2)
    return (w_ih, w_hh, b_ih, b_hh, w1, b1, w2, b2)


if __name__ == "__main__":
    # Small shapes consistent with the module: batch=2, seq=8, input_dim=8,
    # hidden_dims=[32, 16], n_class=5.
    batch, seq_len, input_dim = 2, 8, 8
    hidden_dims = (32, 16)
    n_class = 5

    key = jax.random.PRNGKey(0)
    k_x, k_p = jax.random.split(key)
    sequence = jax.random.normal(k_x, (batch, seq_len, input_dim), jnp.float32)
    params = init_params(k_p, input_dim, hidden_dims, n_class)

    prepared = prepare_params(params)               # one-time packing
    out = lstm_classifier_forward(sequence, prepared)
    out = jax.block_until_ready(out)

    ref = reference_forward(sequence, params)
    assert out.shape == (batch, n_class)
    np.testing.assert_allclose(np.asarray(out), np.asarray(ref),
                               rtol=1e-5, atol=1e-5)

    print("KERNEL_OK")
</pallas_src>

<mosaic_0001>
module attributes {stable_mosaic.version = 11 : i64} {
  func.func @kernel(%arg0: memref<16x8xf32, #tpu.memory_space<vmem>>, %arg1: memref<40x128xf32, #tpu.memory_space<vmem>>, %arg2: memref<72x128xf32, #tpu.memory_space<vmem>>, %arg3: memref<2x5xf32, #tpu.memory_space<vmem>>) attributes {dimension_semantics = [], scalar_prefetch = 0 : i64, scratch_operands = 0 : i64, tpu.core_type = #tpu.core_type<tc>} {
    %c0 = arith.constant 0 : index
    %c0_0 = arith.constant 0 : index
    %0 = vector.load %arg1[%c0, %c0_0] : memref<40x128xf32, #tpu.memory_space<vmem>>, vector<8x128xf32>
    %c8 = arith.constant 8 : index
    %c0_1 = arith.constant 0 : index
    %1 = vector.load %arg1[%c8, %c0_1] : memref<40x128xf32, #tpu.memory_space<vmem>>, vector<32x128xf32>
    %c0_2 = arith.constant 0 : index
    %c0_3 = arith.constant 0 : index
    %2 = vector.load %arg2[%c0_2, %c0_3] : memref<72x128xf32, #tpu.memory_space<vmem>>, vector<1x128xf32>
    %c0_4 = arith.constant 0 : index
    %c0_5 = arith.constant 0 : index
    %3 = vector.load %arg0[%c0_4, %c0_5] : memref<16x8xf32, #tpu.memory_space<vmem>>, vector<16x8xf32>
    %cst = arith.constant dense<0.000000e+00> : vector<16x128xf32>
    %4 = tpu.matmul %3, %0, %cst {dimension_numbers = #tpu.dot_dimension_numbers<[1], [0], [0], [1], [0, 0, 1, 1], [], []>} : vector<16x8xf32>, vector<8x128xf32>, vector<16x128xf32> -> vector<16x128xf32>
    %5 = vector.broadcast %2 : vector<1x128xf32> to vector<16x128xf32>
    %6 = arith.addf %4, %5 : vector<16x128xf32>
    %7 = tpu.iota {dimensions = array<i32: 1>} : vector<2x128xi32>
    %c64_i32 = arith.constant 64 : i32
    %8 = vector.broadcast %c64_i32 : i32 to vector<2x128xi32>
    %9 = arith.cmpi sge, %7, %8 : vector<2x128xi32>
    %c96_i32 = arith.constant 96 : i32
    %10 = vector.broadcast %c96_i32 : i32 to vector<2x128xi32>
    %11 = arith.cmpi slt, %7, %10 : vector<2x128xi32>
    %12 = arith.andi %9, %11 : vector<2x128xi1>
    %13 = vector.extract_strided_slice %6 {offsets = [0, 0], sizes = [2, 128], strides = [1, 1]} : vector<16x128xf32> to vector<2x128xf32>
    %14 = math.tanh %13 : vector<2x128xf32>
    %15 = arith.negf %13 : vector<2x128xf32>
    %16 = math.exp %15 : vector<2x128xf32>
    %cst_6 = arith.constant 1.000000e+00 : f32
    %17 = vector.broadcast %cst_6 : f32 to vector<2x128xf32>
    %18 = arith.addf %17, %16 : vector<2x128xf32>
    %19 = arith.divf %17, %18 : vector<2x128xf32>
    %20 = arith.select %12, %14, %19 : vector<2x128xi1>, vector<2x128xf32>
    %21 = vector.extract_strided_slice %20 {offsets = [0, 0], sizes = [2, 32], strides = [1, 1]} : vector<2x128xf32> to vector<2x32xf32>
    %22 = vector.extract_strided_slice %20 {offsets = [0, 64], sizes = [2, 32], strides = [1, 1]} : vector<2x128xf32> to vector<2x32xf32>
    %23 = vector.extract_strided_slice %20 {offsets = [0, 96], sizes = [2, 32], strides = [1, 1]} : vector<2x128xf32> to vector<2x32xf32>
    %24 = arith.mulf %21, %22 : vector<2x32xf32>
    %25 = math.tanh %24 : vector<2x32xf32>
    %26 = arith.mulf %23, %25 : vector<2x32xf32>
    %27 = vector.extract_strided_slice %6 {offsets = [2, 0], sizes = [2, 128], strides = [1, 1]} : vector<16x128xf32> to vector<2x128xf32>
    %cst_7 = arith.constant dense<0.000000e+00> : vector<2x128xf32>
    %28 = tpu.matmul %26, %1, %cst_7 {dimension_numbers = #tpu.dot_dimension_numbers<[1], [0], [0], [1], [0, 0, 1, 1], [], []>} : vector<2x32xf32>, vector<32x128xf32>, vector<2x128xf32> -> vector<2x128xf32>
    %29 = arith.addf %27, %28 : vector<2x128xf32>
    %30 = math.tanh %29 : vector<2x128xf32>
    %31 = arith.negf %29 : vector<2x128xf32>
    %32 = math.exp %31 : vector<2x128xf32>
    %cst_8 = arith.constant 1.000000e+00 : f32
    %33 = vector.broadcast %cst_8 : f32 to vector<2x128xf32>
    %34 = arith.addf %33, %32 : vector<2x128xf32>
    %35 = arith.divf %33, %34 : vector<2x128xf32>
    %36 = arith.select %12, %30, %35 : vector<2x128xi1>, vector<2x128xf32>
    %37 = vector.extract_strided_slice %36 {offsets = [0, 0], sizes = [2, 32], strides = [1, 1]} : vector<2x128xf32> to vector<2x32xf32>
    %38 = vector.extract_strided_slice %36 {offsets = [0, 32], sizes = [2, 32], strides = [1, 1]} : vector<2x128xf32> to vector<2x32xf32>
    %39 = vector.extract_strided_slice %36 {offsets = [0, 64], sizes = [2, 32], strides = [1, 1]} : vector<2x128xf32> to vector<2x32xf32>
    %40 = vector.extract_strided_slice %36 {offsets = [0, 96], sizes = [2, 32], strides = [1, 1]} : vector<2x128xf32> to vector<2x32xf32>
    %41 = arith.mulf %38, %24 : vector<2x32xf32>
    %42 = arith.mulf %37, %39 : vector<2x32xf32>
    %43 = arith.addf %41, %42 : vector<2x32xf32>
    %44 = math.tanh %43 : vector<2x32xf32>
    %45 = arith.mulf %40, %44 : vector<2x32xf32>
    %46 = vector.extract_strided_slice %6 {offsets = [4, 0], sizes = [2, 128], strides = [1, 1]} : vector<16x128xf32> to vector<2x128xf32>
    %cst_9 = arith.constant dense<0.000000e+00> : vector<2x128xf32>
    %47 = tpu.matmul %45, %1, %cst_9 {dimension_numbers = #tpu.dot_dimension_numbers<[1], [0], [0], [1], [0, 0, 1, 1], [], []>} : vector<2x32xf32>, vector<32x128xf32>, vector<2x128xf32> -> vector<2x128xf32>
    %48 = arith.addf %46, %47 : vector<2x128xf32>
    %49 = math.tanh %48 : vector<2x128xf32>
    %50 = arith.negf %48 : vector<2x128xf32>
    %51 = math.exp %50 : vector<2x128xf32>
    %cst_10 = arith.constant 1.000000e+00 : f32
    %52 = vector.broadcast %cst_10 : f32 to vector<2x128xf32>
    %53 = arith.addf %52, %51 : vector<2x128xf32>
    %54 = arith.divf %52, %53 : vector<2x128xf32>
    %55 = arith.select %12, %49, %54 : vector<2x128xi1>, vector<2x128xf32>
    %56 = vector.extract_strided_slice %55 {offsets = [0, 0], sizes = [2, 32], strides = [1, 1]} : vector<2x128xf32> to vector<2x32xf32>
    %57 = vector.extract_strided_slice %55 {offsets = [0, 32], sizes = [2, 32], strides = [1, 1]} : vector<2x128xf32> to vector<2x32xf32>
    %58 = vector.extract_strided_slice %55 {offsets = [0, 64], sizes = [2, 32], strides = [1, 1]} : vector<2x128xf32> to vector<2x32xf32>
    %59 = vector.extract_strided_slice %55 {offsets = [0, 96], sizes = [2, 32], strides = [1, 1]} : vector<2x128xf32> to vector<2x32xf32>
    %60 = arith.mulf %57, %43 : vector<2x32xf32>
    %61 = arith.mulf %56, %58 : vector<2x32xf32>
    %62 = arith.addf %60, %61 : vector<2x32xf32>
    %63 = math.tanh %62 : vector<2x32xf32>
    %64 = arith.mulf %59, %63 : vector<2x32xf32>
    %65 = vector.extract_strided_slice %6 {offsets = [6, 0], sizes = [2, 128], strides = [1, 1]} : vector<16x128xf32> to vector<2x128xf32>
    %cst_11 = arith.constant dense<0.000000e+00> : vector<2x128xf32>
    %66 = tpu.matmul %64, %1, %cst_11 {dimension_numbers = #tpu.dot_dimension_numbers<[1], [0], [0], [1], [0, 0, 1, 1], [], []>} : vector<2x32xf32>, vector<32x128xf32>, vector<2x128xf32> -> vector<2x128xf32>
    %67 = arith.addf %65, %66 : vector<2x128xf32>
    %68 = math.tanh %67 : vector<2x128xf32>
    %69 = arith.negf %67 : vector<2x128xf32>
    %70 = math.exp %69 : vector<2x128xf32>
    %cst_12 = arith.constant 1.000000e+00 : f32
    %71 = vector.broadcast %cst_12 : f32 to vector<2x128xf32>
    %72 = arith.addf %71, %70 : vector<2x128xf32>
    %73 = arith.divf %71, %72 : vector<2x128xf32>
    %74 = arith.select %12, %68, %73 : vector<2x128xi1>, vector<2x128xf32>
    %75 = vector.extract_strided_slice %74 {offsets = [0, 0], sizes = [2, 32], strides = [1, 1]} : vector<2x128xf32> to vector<2x32xf32>
    %76 = vector.extract_strided_slice %74 {offsets = [0, 32], sizes = [2, 32], strides = [1, 1]} : vector<2x128xf32> to vector<2x32xf32>
    %77 = vector.extract_strided_slice %74 {offsets = [0, 64], sizes = [2, 32], strides = [1, 1]} : vector<2x128xf32> to vector<2x32xf32>
    %78 = vector.extract_strided_slice %74 {offsets = [0, 96], sizes = [2, 32], strides = [1, 1]} : vector<2x128xf32> to vector<2x32xf32>
    %79 = arith.mulf %76, %62 : vector<2x32xf32>
    %80 = arith.mulf %75, %77 : vector<2x32xf32>
    %81 = arith.addf %79, %80 : vector<2x32xf32>
    %82 = math.tanh %81 : vector<2x32xf32>
    %83 = arith.mulf %78, %82 : vector<2x32xf32>
    %84 = vector.extract_strided_slice %6 {offsets = [8, 0], sizes = [2, 128], strides = [1, 1]} : vector<16x128xf32> to vector<2x128xf32>
    %cst_13 = arith.constant dense<0.000000e+00> : vector<2x128xf32>
    %85 = tpu.matmul %83, %1, %cst_13 {dimension_numbers = #tpu.dot_dimension_numbers<[1], [0], [0], [1], [0, 0, 1, 1], [], []>} : vector<2x32xf32>, vector<32x128xf32>, vector<2x128xf32> -> vector<2x128xf32>
    %86 = arith.addf %84, %85 : vector<2x128xf32>
    %87 = math.tanh %86 : vector<2x128xf32>
    %88 = arith.negf %86 : vector<2x128xf32>
    %89 = math.exp %88 : vector<2x128xf32>
    %cst_14 = arith.constant 1.000000e+00 : f32
    %90 = vector.broadcast %cst_14 : f32 to vector<2x128xf32>
    %91 = arith.addf %90, %89 : vector<2x128xf32>
    %92 = arith.divf %90, %91 : vector<2x128xf32>
    %93 = arith.select %12, %87, %92 : vector<2x128xi1>, vector<2x128xf32>
    %94 = vector.extract_strided_slice %93 {offsets = [0, 0], sizes = [2, 32], strides = [1, 1]} : vector<2x128xf32> to vector<2x32xf32>
    %95 = vector.extract_strided_slice %93 {offsets = [0, 32], sizes = [2, 32], strides = [1, 1]} : vector<2x128xf32> to vector<2x32xf32>
    %96 = vector.extract_strided_slice %93 {offsets = [0, 64], sizes = [2, 32], strides = [1, 1]} : vector<2x128xf32> to vector<2x32xf32>
    %97 = vector.extract_strided_slice %93 {offsets = [0, 96], sizes = [2, 32], strides = [1, 1]} : vector<2x128xf32> to vector<2x32xf32>
    %98 = arith.mulf %95, %81 : vector<2x32xf32>
    %99 = arith.mulf %94, %96 : vector<2x32xf32>
    %100 = arith.addf %98, %99 : vector<2x32xf32>
    %101 = math.tanh %100 : vector<2x32xf32>
    %102 = arith.mulf %97, %101 : vector<2x32xf32>
    %103 = vector.extract_strided_slice %6 {offsets = [10, 0], sizes = [2, 128], strides = [1, 1]} : vector<16x128xf32> to vector<2x128xf32>
    %cst_15 = arith.constant dense<0.000000e+00> : vector<2x128xf32>
    %104 = tpu.matmul %102, %1, %cst_15 {dimension_numbers = #tpu.dot_dimension_numbers<[1], [0], [0], [1], [0, 0, 1, 1], [], []>} : vector<2x32xf32>, vector<32x128xf32>, vector<2x128xf32> -> vector<2x128xf32>
    %105 = arith.addf %103, %104 : vector<2x128xf32>
    %106 = math.tanh %105 : vector<2x128xf32>
    %107 = arith.negf %105 : vector<2x128xf32>
    %108 = math.exp %107 : vector<2x128xf32>
    %cst_16 = arith.constant 1.000000e+00 : f32
    %109 = vector.broadcast %cst_16 : f32 to vector<2x128xf32>
    %110 = arith.addf %109, %108 : vector<2x128xf32>
    %111 = arith.divf %109, %110 : vector<2x128xf32>
    %112 = arith.select %12, %106, %111 : vector<2x128xi1>, vector<2x128xf32>
    %113 = vector.extract_strided_slice %112 {offsets = [0, 0], sizes = [2, 32], strides = [1, 1]} : vector<2x128xf32> to vector<2x32xf32>
    %114 = vector.extract_strided_slice %112 {offsets = [0, 32], sizes = [2, 32], strides = [1, 1]} : vector<2x128xf32> to vector<2x32xf32>
    %115 = vector.extract_strided_slice %112 {offsets = [0, 64], sizes = [2, 32], strides = [1, 1]} : vector<2x128xf32> to vector<2x32xf32>
    %116 = vector.extract_strided_slice %112 {offsets = [0, 96], sizes = [2, 32], strides = [1, 1]} : vector<2x128xf32> to vector<2x32xf32>
    %117 = arith.mulf %114, %100 : vector<2x32xf32>
    %118 = arith.mulf %113, %115 : vector<2x32xf32>
    %119 = arith.addf %117, %118 : vector<2x32xf32>
    %120 = math.tanh %119 : vector<2x32xf32>
    %121 = arith.mulf %116, %120 : vector<2x32xf32>
    %122 = vector.extract_strided_slice %6 {offsets = [12, 0], sizes = [2, 128], strides = [1, 1]} : vector<16x128xf32> to vector<2x128xf32>
    %cst_17 = arith.constant dense<0.000000e+00> : vector<2x128xf32>
    %123 = tpu.matmul %121, %1, %cst_17 {dimension_numbers = #tpu.dot_dimension_numbers<[1], [0], [0], [1], [0, 0, 1, 1], [], []>} : vector<2x32xf32>, vector<32x128xf32>, vector<2x128xf32> -> vector<2x128xf32>
    %124 = arith.addf %122, %123 : vector<2x128xf32>
    %125 = math.tanh %124 : vector<2x128xf32>
    %126 = arith.negf %124 : vector<2x128xf32>
    %127 = math.exp %126 : vector<2x128xf32>
    %cst_18 = arith.constant 1.000000e+00 : f32
    %128 = vector.broadcast %cst_18 : f32 to vector<2x128xf32>
    %129 = arith.addf %128, %127 : vector<2x128xf32>
    %130 = arith.divf %128, %129 : vector<2x128xf32>
    %131 = arith.select %12, %125, %130 : vector<2x128xi1>, vector<2x128xf32>
    %132 = vector.extract_strided_slice %131 {offsets = [0, 0], sizes = [2, 32], strides = [1, 1]} : vector<2x128xf32> to vector<2x32xf32>
    %133 = vector.extract_strided_slice %131 {offsets = [0, 32], sizes = [2, 32], strides = [1, 1]} : vector<2x128xf32> to vector<2x32xf32>
    %134 = vector.extract_strided_slice %131 {offsets = [0, 64], sizes = [2, 32], strides = [1, 1]} : vector<2x128xf32> to vector<2x32xf32>
    %135 = vector.extract_strided_slice %131 {offsets = [0, 96], sizes = [2, 32], strides = [1, 1]} : vector<2x128xf32> to vector<2x32xf32>
    %136 = arith.mulf %133, %119 : vector<2x32xf32>
    %137 = arith.mulf %132, %134 : vector<2x32xf32>
    %138 = arith.addf %136, %137 : vector<2x32xf32>
    %139 = math.tanh %138 : vector<2x32xf32>
    %140 = arith.mulf %135, %139 : vector<2x32xf32>
    %141 = vector.extract_strided_slice %6 {offsets = [14, 0], sizes = [2, 128], strides = [1, 1]} : vector<16x128xf32> to vector<2x128xf32>
    %cst_19 = arith.constant dense<0.000000e+00> : vector<2x128xf32>
    %142 = tpu.matmul %140, %1, %cst_19 {dimension_numbers = #tpu.dot_dimension_numbers<[1], [0], [0], [1], [0, 0, 1, 1], [], []>} : vector<2x32xf32>, vector<32x128xf32>, vector<2x128xf32> -> vector<2x128xf32>
    %143 = arith.addf %141, %142 : vector<2x128xf32>
    %144 = math.tanh %143 : vector<2x128xf32>
    %145 = arith.negf %143 : vector<2x128xf32>
    %146 = math.exp %145 : vector<2x128xf32>
    %cst_20 = arith.constant 1.000000e+00 : f32
    %147 = vector.broadcast %cst_20 : f32 to vector<2x128xf32>
    %148 = arith.addf %147, %146 : vector<2x128xf32>
    %149 = arith.divf %147, %148 : vector<2x128xf32>
    %150 = arith.select %12, %144, %149 : vector<2x128xi1>, vector<2x128xf32>
    %151 = vector.extract_strided_slice %150 {offsets = [0, 0], sizes = [2, 32], strides = [1, 1]} : vector<2x128xf32> to vector<2x32xf32>
    %152 = vector.extract_strided_slice %150 {offsets = [0, 32], sizes = [2, 32], strides = [1, 1]} : vector<2x128xf32> to vector<2x32xf32>
    %153 = vector.extract_strided_slice %150 {offsets = [0, 64], sizes = [2, 32], strides = [1, 1]} : vector<2x128xf32> to vector<2x32xf32>
    %154 = vector.extract_strided_slice %150 {offsets = [0, 96], sizes = [2, 32], strides = [1, 1]} : vector<2x128xf32> to vector<2x32xf32>
    %155 = arith.mulf %152, %138 : vector<2x32xf32>
    %156 = arith.mulf %151, %153 : vector<2x32xf32>
    %157 = arith.addf %155, %156 : vector<2x32xf32>
    %158 = math.tanh %157 : vector<2x32xf32>
    %159 = arith.mulf %154, %158 : vector<2x32xf32>
    %c8_21 = arith.constant 8 : index
    %c0_22 = arith.constant 0 : index
    %160 = vector.load %arg2[%c8_21, %c0_22] : memref<72x128xf32, #tpu.memory_space<vmem>>, vector<32x16xf32>
    %c40 = arith.constant 40 : index
    %c0_23 = arith.constant 0 : index
    %161 = vector.load %arg2[%c40, %c0_23] : memref<72x128xf32, #tpu.memory_space<vmem>>, vector<1x16xf32>
    %c48 = arith.constant 48 : index
    %c0_24 = arith.constant 0 : index
    %162 = vector.load %arg2[%c48, %c0_24] : memref<72x128xf32, #tpu.memory_space<vmem>>, vector<16x5xf32>
    %c64 = arith.constant 64 : index
    %c0_25 = arith.constant 0 : index
    %163 = vector.load %arg2[%c64, %c0_25] : memref<72x128xf32, #tpu.memory_space<vmem>>, vector<1x5xf32>
    %cst_26 = arith.constant dense<0.000000e+00> : vector<2x16xf32>
    %164 = tpu.matmul %159, %160, %cst_26 {dimension_numbers = #tpu.dot_dimension_numbers<[1], [0], [0], [1], [0, 0, 1, 1], [], []>} : vector<2x32xf32>, vector<32x16xf32>, vector<2x16xf32> -> vector<2x16xf32>
    %165 = vector.broadcast %161 : vector<1x16xf32> to vector<2x16xf32>
    %166 = arith.addf %164, %165 : vector<2x16xf32>
    %cst_27 = arith.constant 0.000000e+00 : f32
    %167 = vector.broadcast %cst_27 : f32 to vector<2x16xf32>
    %168 = arith.maximumf %166, %167 : vector<2x16xf32>
    %cst_28 = arith.constant dense<0.000000e+00> : vector<2x5xf32>
    %169 = tpu.matmul %168, %162, %cst_28 {dimension_numbers = #tpu.dot_dimension_numbers<[1], [0], [0], [1], [0, 0, 1, 1], [], []>} : vector<2x16xf32>, vector<16x5xf32>, vector<2x5xf32> -> vector<2x5xf32>
    %170 = vector.broadcast %163 : vector<1x5xf32> to vector<2x5xf32>
    %171 = arith.addf %169, %170 : vector<2x5xf32>
    %c0_29 = arith.constant 0 : index
    %c0_30 = arith.constant 0 : index
    %172 = vector.load %arg3[%c0_29, %c0_30] : memref<2x5xf32, #tpu.memory_space<vmem>>, vector<2x5xf32>
    tpu.vector_store %arg3[%c0_29, %c0_30], %171 {strides = array<i32>} : memref<2x5xf32, #tpu.memory_space<vmem>>, vector<2x5xf32>,
    return
  }
}

</mosaic_0001>

<bundles_post_ra>
// kernel: tpu_custom_call.1
= control target key start
LH: loop header
LB: loop body
LE: loop exit
PB: predicated region body
PF: predicated region fallthrough
CT: control target
= control target key end

     0   :  { %8 = vsyncpa [#allocation3], 0  ;;  %s992_s0 = inlined_call_operand.vmem [shape: f32[16,8], index: 0, kind: input, shape index: {}]   ;;  %s993_s1 = inlined_call_operand.hbm [shape: f32[40,128], index: 1, kind: input, shape index: {}]   ;;  %s994_s2 = inlined_call_operand.hbm [shape: f32[72,128], index: 2, kind: input, shape index: {}]   ;;  %s995_s3 = inlined_call_operand.hbm [shape: f32[2,5], index: 3, kind: output, shape index: {}]  }
   0x1   :  { %9 = vsyncpa [#allocation6], 0 }
   0x2   :  { %10 = vsyncpa [#allocation4], 0  ;;  %s17_s14 = sshll.u32 %s993_s1, 4  ;;  %s871_s15 = smov [#allocation2]   ;;  %s18_s14 = int_to_ptr.hbm [resolvable:$true] %s17_s14 }
   0x3   :  { %s19_s16 = sshll.u32 %s871_s15, 4  ;;  %s30_s19 = sshll.u32 %s994_s2, 4  ;;  %s20_s16 = int_to_ptr.vmem [resolvable:$true] %s19_s16  ;;  %s31_s19 = int_to_ptr.hbm [resolvable:$true] %s30_s19 }
   0x4   :  { %s872_s20 = smov 128   ;;  %s873_s21 = smov 8  }
   0x5   :  { %25 = dma.hbm_to_vmem [thread:$0]  %s18_s14, 640, %s20_s16, [#allocation3], %s872_s20, %s872_s20, %s873_s21  }
   0x6   :  { %s874_s22 = smov [#allocation5]  }
   0x7   :  { %s32_s23 = sshll.u32 %s874_s22, 4  ;;  %s33_s23 = int_to_ptr.vmem [resolvable:$true] %s32_s23 }
   0x8   :  { %38 = dma.hbm_to_vmem [thread:$0]  %s31_s19, 1152, %s33_s23, [#allocation6], %s872_s20, %s872_s20, %s873_s21  }
   0x9   :  { %865 = dma.done.wait [#allocation3], 640  }
   0xa   :  { %866 = vsyncadd [#allocation3], 4294966656 }
   0xb   :  { %867 = dma.done.wait [#allocation6], 1152  }
   0xc   :  { %868 = vsyncadd [#allocation6], 4294966144  ;;  %vm56_vm0 = vcmask 64512   ;;  %v47_v0 = vld [vmem:[#allocation2] sm:$0xff]  ;;  %v909_v2 = vld [vmem:[#allocation5] ss:$0 sm:$0xff]  ;;  %v86_v8 = vlaneseq }
   0xd   :  { %v53_v1 = vld [vmem:[%s992_s0] sm:$0xff]  ;;  %78 = vmatpush.msra.mxu0 %v47_v0  ;;  %s875_s2 = smov 64   ;;  %s876_s25 = smov 32   ;;  %v50_v28 = vld [vmem:[#allocation2 + $0x18] sm:$0xff]  ;;  %v49_v29 = vld [vmem:[#allocation2 + $0x10] sm:$0xff]  ;;  %vm126_vm8 = vcmask 261120  }
   0xe   :  { %699 = vmatmul.msk.f32.vlgmr.msra.gmra.mxu0 %vm56_vm0, %v53_v1  ;;  %v87_v10 = vand.u32 127, %v86_v8  ;;  %s877_s26 = smov 96   ;;  %v51_v27 = vld [vmem:[#allocation2 + $0x20] sm:$0xff]  ;;  %v48_v30 = vld [vmem:[#allocation2 + $0x8] sm:$0xff]  ;;  %v618_v16 = vld [vmem:[#allocation5 + $0x8] sm:$0xff]  ;;  %s688_s5 = sshll.u32 %s995_s3, 4  ;;  %s689_s5 = int_to_ptr.hbm [resolvable:$true] %s688_s5 }
   0xf   :  { %141 = vmatpush.msra.mxu1 %v51_v27  ;;  %214 = vmatpush.msra.mxu2 %v51_v27 }
  0x10   :  { %vm88_vm1 = vcmp.ge.s32.totalorder %v87_v10, 64  ;;  %vm89_vm2 = vcmp.lt.s32.totalorder %v87_v10, 96  ;;  %285 = vmatpush.msra.mxu3 %v51_v27  ;;  %565 = vmatpush.msrb.mxu0 %v51_v27 }
  0x11   :  { %vm916_vm4 = vmand %vm88_vm1, %vm89_vm2  ;;  %142 = vmatpush.msra.mxu1 %v50_v28  ;;  %215 = vmatpush.msra.mxu2 %v50_v28 }
  0x12   :  { %286 = vmatpush.msra.mxu3 %v50_v28  ;;  %566 = vmatpush.msrb.mxu0 %v50_v28 }
  0x13   :  { %143 = vmatpush.msra.mxu1 %v49_v29  ;;  %216 = vmatpush.msra.mxu2 %v49_v29 }
  0x14   :  { %287 = vmatpush.msra.mxu3 %v49_v29  ;;  %567 = vmatpush.msrb.mxu0 %v49_v29 }
  0x15   :  { %144 = vmatpush.msra.mxu1 %v48_v30  ;;  %217 = vmatpush.msra.mxu2 %v48_v30 }
  0x16   :  { %288 = vmatpush.msra.mxu3 %v48_v30  ;;  %568 = vmatpush.msrb.mxu0 %v48_v30 }
  0x17   :  { %356 = vmatpush.msrb.mxu1 %v51_v27  ;;  %423 = vmatpush.msrb.mxu2 %v51_v27 }
  0x18   :  { %494 = vmatpush.msrb.mxu3 %v51_v27 }
  0x19   :  { %357 = vmatpush.msrb.mxu1 %v50_v28  ;;  %424 = vmatpush.msrb.mxu2 %v50_v28 }
  0x1a   :  { %495 = vmatpush.msrb.mxu3 %v50_v28 }
  0x1b   :  { %358 = vmatpush.msrb.mxu1 %v49_v29  ;;  %425 = vmatpush.msrb.mxu2 %v49_v29 }
  0x1c   :  { %496 = vmatpush.msrb.mxu3 %v49_v29 }
  0x1d   :  { %359 = vmatpush.msrb.mxu1 %v48_v30  ;;  %426 = vmatpush.msrb.mxu2 %v48_v30 }
  0x1e   :  { %497 = vmatpush.msrb.mxu3 %v48_v30 }
  0x8b   :  { %v80_v3 = vpop.f32.mrf.mxu0 }
  0x8c   :  { %v912_v4 = vadd.f32 %v909_v2, %v80_v3 }
  0x8e   :  { %v701_v5 = vmul.f32 -1.442695, %v912_v4 }
  0x90   :  { %729 = vpow2.f32 %v701_v5 }
  0x96   :  { %v730_v6 = vpop.eup %729 }
  0x97   :  { %v95_v7 = vadd.f32 1.0, %v730_v6 }
  0x99   :  { %731 = vrcp.f32 %v95_v7  ;;  %v107_v13 = vand.u32 2147483648, %v95_v7  ;;  %v105_v15 = vand.u32 2147483647, %v95_v7  ;;  %vm101_vm5 = vweird.f32 %v95_v7 }
  0x9a   :  { %733 = vtanh.f32 %v912_v4 }
  0x9b   :  { %v108_v18 = vor.u32 1.1754944e-38, %v107_v13  ;;  %vm106_vm7 = vcmp.eq.f32.partialorder %v105_v15, 8.507059e+37 }
  0x9f   :  { %v732_v9 = vpop.eup %731 }
  0xa0   :  { %v97_v11 = vmul.f32 %v732_v9, %v95_v7  ;;  %vm102_vm3 = vweird.f32 %v732_v9  ;;  %v734_v20 = vpop.eup %733 }
  0xa1   :  { %vm103_vm6 = vmor %vm101_vm5, %vm102_vm3 }
  0xa2   :  { %v98_v12 = vsub.f32 1.0, %v97_v11 }
  0xa4   :  { %v99_v14 = vmul.f32 %v732_v9, %v98_v12 }
  0xa6   :  { %v100_v17 = vadd.f32 %v732_v9, %v99_v14 }
  0xa8   :  { %v104_v19 = vsel %vm103_vm6, %v732_v9, %v100_v17 }
  0xa9   :  { %v109_v21 = vsel %vm106_vm7, %v108_v18, %v104_v19 }
  0xaa   :  { %v111_v22 = vsel %vm916_vm4, %v734_v20, %v109_v21 }
  0xab   :  { %113 = vrot.lane.b32.xlu0 %v111_v22, %s875_s2 }
 0x11d   :  { %v114_v23 = vpop.permute.xlu0 %113 }
 0x11e   :  { %v116_v24 = vmul.f32 %v114_v23, %v111_v22 }
 0x120   :  { %735 = vtanh.f32 %v116_v24  ;;  %v175_v25 = vrot.slane %v116_v24, 6 }
 0x122   :  { %176 = vrot.lane.b32.xlu2 %v175_v25, %s876_s25 }
 0x126   :  { %v736_v26 = vpop.eup %735 }
 0x127   :  { %119 = vrot.lane.b32.xlu0 %v736_v26, %s877_s26 }
 0x17c   :  { %v177_v54 = vpop.permute.xlu2 %176 }
 0x199   :  { %v120_v31 = vpop.permute.xlu0 %119 }
 0x19a   :  { %v122_v32 = vmul.f32 %v120_v31, %v111_v22 }
 0x19c   :  { %124 = vrot.lane.b32.xlu1 %v122_v32, %s876_s25 }
 0x20e   :  { %v125_v33 = vpop.permute.xlu1 %124 }
 0x20f   :  { %702 = vmatmul.msk.f32.vlgmr.msra.gmra.mxu1 %vm126_vm8, %v125_v33 }
 0x28c   :  { %v146_v34 = vpop.f32.mrf.mxu1 }
 0x28d   :  { %v150_v35 = vrot.slane %v146_v34, 6 }
 0x28f   :  { %v152_v36 = vadd.f32 %v150_v35, %v912_v4 }
 0x291   :  { %v703_v37 = vmul.f32 -1.442695, %v152_v36 }
 0x293   :  { %737 = vpow2.f32 %v703_v37 }
 0x299   :  { %v738_v38 = vpop.eup %737 }
 0x29a   :  { %v157_v39 = vadd.f32 1.0, %v738_v38 }
 0x29c   :  { %739 = vrcp.f32 %v157_v39  ;;  %v169_v43 = vand.u32 2147483648, %v157_v39  ;;  %v167_v45 = vand.u32 2147483647, %v157_v39  ;;  %vm163_vm10 = vweird.f32 %v157_v39 }
 0x29d   :  { %741 = vtanh.f32 %v152_v36 }
 0x29e   :  { %v170_v47 = vor.u32 1.1754944e-38, %v169_v43  ;;  %vm168_vm12 = vcmp.eq.f32.partialorder %v167_v45, 8.507059e+37 }
 0x2a2   :  { %v740_v40 = vpop.eup %739 }
 0x2a3   :  { %v159_v41 = vmul.f32 %v740_v40, %v157_v39  ;;  %vm164_vm9 = vweird.f32 %v740_v40  ;;  %v742_v49 = vpop.eup %741 }
 0x2a4   :  { %vm165_vm11 = vmor %vm163_vm10, %vm164_vm9 }
 0x2a5   :  { %v160_v42 = vsub.f32 1.0, %v159_v41 }
 0x2a7   :  { %v161_v44 = vmul.f32 %v740_v40, %v160_v42 }
 0x2a9   :  { %v162_v46 = vadd.f32 %v740_v40, %v161_v44 }
 0x2ab   :  { %v166_v48 = vsel %vm165_vm11, %v740_v40, %v162_v46 }
 0x2ac   :  { %v171_v50 = vsel %vm168_vm12, %v170_v47, %v166_v48 }
 0x2ad   :  { %v173_v51 = vsel %vm916_vm4, %v742_v49, %v171_v50 }
 0x2ae   :  { %181 = vrot.lane.b32.xlu1 %v173_v51, %s875_s2  ;;  %v179_v55 = vmul.f32 %v177_v54, %v173_v51 }
 0x320   :  { %v182_v52 = vpop.permute.xlu1 %181 }
 0x321   :  { %v184_v53 = vmul.f32 %v182_v52, %v173_v51 }
 0x323   :  { %186 = vrot.lane.b32.xlu2 %v184_v53, %s876_s25 }
 0x37d   :  { %v187_v56 = vpop.permute.xlu2 %186 }
 0x37e   :  { %v189_v57 = vadd.f32 %v187_v56, %v179_v55  ;;  %v54_v55 = vld [vmem:[%s992_s0 + $0x8] sm:$0xff]  ;;  %s878_s0 = smov [#allocation7]  }
 0x37f   :  { %700 = vmatmul.msk.f32.gmra.mxu0 %vm56_vm0, %v54_v55  ;;  %s686_s29 = sshll.u32 %s878_s0, 4  ;;  %s687_s29 = int_to_ptr.vmem [resolvable:$true] %s686_s29 }
 0x380   :  { %743 = vtanh.f32 %v189_v57  ;;  %v248_v22 = vrot.slane %v189_v57, 6 }
 0x386   :  { %v744_v58 = vpop.eup %743 }
 0x387   :  { %192 = vrot.lane.b32.xlu0 %v744_v58, %s875_s2 }
 0x3f9   :  { %v193_v59 = vpop.permute.xlu0 %192 }
 0x3fa   :  { %v195_v60 = vmul.f32 %v193_v59, %v173_v51 }
 0x3fc   :  { %v197_v61 = vrot.slane %v195_v60, 2  ;;  %v83_v60 = vpop.f32.mrf.mxu0 }
 0x3fe   :  { %198 = vrot.lane.b32.xlu1 %v197_v61, %s876_s25  ;;  %v955_v61 = vadd.f32 %v909_v2, %v83_v60 }
 0x470   :  { %v199_v62 = vpop.permute.xlu1 %198 }
 0x471   :  { %704 = vmatmul.msk.f32.vlgmr.msra.gmra.mxu2 %vm126_vm8, %v199_v62 }
 0x4f4   :  { %v219_v63 = vpop.f32.mrf.mxu2 }
 0x4f5   :  { %v223_v0 = vrot.slane %v219_v63, 4 }
 0x4f7   :  { %v225_v1 = vadd.f32 %v223_v0, %v912_v4 }
 0x4f9   :  { %v705_v3 = vmul.f32 -1.442695, %v225_v1 }
 0x4fb   :  { %745 = vpow2.f32 %v705_v3 }
 0x501   :  { %v746_v5 = vpop.eup %745 }
 0x502   :  { %v230_v6 = vadd.f32 1.0, %v746_v5 }
 0x504   :  { %747 = vrcp.f32 %v230_v6  ;;  %v242_v10 = vand.u32 2147483648, %v230_v6  ;;  %v240_v12 = vand.u32 2147483647, %v230_v6  ;;  %vm236_vm14 = vweird.f32 %v230_v6 }
 0x505   :  { %749 = vtanh.f32 %v225_v1 }
 0x506   :  { %v243_v14 = vor.u32 1.1754944e-38, %v242_v10  ;;  %vm241_vm1 = vcmp.eq.f32.partialorder %v240_v12, 8.507059e+37 }
 0x50a   :  { %v748_v7 = vpop.eup %747 }
 0x50b   :  { %v232_v8 = vmul.f32 %v748_v7, %v230_v6  ;;  %vm237_vm13 = vweird.f32 %v748_v7  ;;  %v750_v17 = vpop.eup %749 }
 0x50c   :  { %vm238_vm15 = vmor %vm236_vm14, %vm237_vm13 }
 0x50d   :  { %v233_v9 = vsub.f32 1.0, %v232_v8 }
 0x50f   :  { %v234_v11 = vmul.f32 %v748_v7, %v233_v9 }
 0x511   :  { %v235_v13 = vadd.f32 %v748_v7, %v234_v11 }
 0x513   :  { %v239_v15 = vsel %vm238_vm15, %v748_v7, %v235_v13 }
 0x514   :  { %v244_v18 = vsel %vm241_vm1, %v243_v14, %v239_v15 }
 0x515   :  { %v246_v19 = vsel %vm916_vm4, %v750_v17, %v244_v18 }
 0x516   :  { %252 = vrot.lane.b32.xlu2 %v246_v19, %s875_s2  ;;  %v250_v23 = vmul.f32 %v248_v22, %v246_v19 }
 0x570   :  { %v253_v20 = vpop.permute.xlu2 %252 }
 0x571   :  { %v255_v21 = vmul.f32 %v253_v20, %v246_v19 }
 0x573   :  { %257 = vrot.lane.b32.xlu0 %v255_v21, %s876_s25 }
 0x5e5   :  { %v258_v24 = vpop.permute.xlu0 %257 }
 0x5e6   :  { %v260_v25 = vadd.f32 %v258_v24, %v250_v23 }
 0x5e8   :  { %751 = vtanh.f32 %v260_v25  ;;  %v319_v50 = vrot.slane %v260_v25, 6 }
 0x5ee   :  { %v752_v26 = vpop.eup %751 }
 0x5ef   :  { %263 = vrot.lane.b32.xlu1 %v752_v26, %s875_s2 }
 0x661   :  { %v264_v27 = vpop.permute.xlu1 %263 }
 0x662   :  { %v266_v28 = vmul.f32 %v264_v27, %v246_v19 }
 0x664   :  { %v268_v29 = vrot.slane %v266_v28, 4 }
 0x666   :  { %269 = vrot.lane.b32.xlu2 %v268_v29, %s876_s25 }
 0x6c0   :  { %v270_v30 = vpop.permute.xlu2 %269 }
 0x6c1   :  { %706 = vmatmul.msk.f32.vlgmr.msra.gmra.mxu3 %vm126_vm8, %v270_v30 }
 0x744   :  { %v290_v31 = vpop.f32.mrf.mxu3 }
 0x745   :  { %v294_v32 = vrot.slane %v290_v31, 2 }
 0x747   :  { %v296_v33 = vadd.f32 %v294_v32, %v912_v4 }
 0x749   :  { %v707_v34 = vmul.f32 -1.442695, %v296_v33 }
 0x74b   :  { %753 = vpow2.f32 %v707_v34 }
 0x751   :  { %v754_v35 = vpop.eup %753 }
 0x752   :  { %v301_v36 = vadd.f32 1.0, %v754_v35 }
 0x754   :  { %755 = vrcp.f32 %v301_v36  ;;  %v313_v40 = vand.u32 2147483648, %v301_v36  ;;  %v311_v42 = vand.u32 2147483647, %v301_v36  ;;  %vm307_vm3 = vweird.f32 %v301_v36 }
 0x755   :  { %757 = vtanh.f32 %v296_v33 }
 0x756   :  { %v314_v44 = vor.u32 1.1754944e-38, %v313_v40  ;;  %vm312_vm6 = vcmp.eq.f32.partialorder %v311_v42, 8.507059e+37 }
 0x75a   :  { %v756_v37 = vpop.eup %755 }
 0x75b   :  { %v303_v38 = vmul.f32 %v756_v37, %v301_v36  ;;  %vm308_vm2 = vweird.f32 %v756_v37  ;;  %v758_v4 = vpop.eup %757 }
 0x75c   :  { %vm309_vm5 = vmor %vm307_vm3, %vm308_vm2 }
 0x75d   :  { %v304_v39 = vsub.f32 1.0, %v303_v38 }
 0x75f   :  { %v305_v41 = vmul.f32 %v756_v37, %v304_v39 }
 0x761   :  { %v306_v43 = vadd.f32 %v756_v37, %v305_v41 }
 0x763   :  { %v310_v45 = vsel %vm309_vm5, %v756_v37, %v306_v43 }
 0x764   :  { %v315_v46 = vsel %vm312_vm6, %v314_v44, %v310_v45 }
 0x765   :  { %v317_v47 = vsel %vm916_vm4, %v758_v4, %v315_v46 }
 0x766   :  { %323 = vrot.lane.b32.xlu0 %v317_v47, %s875_s2  ;;  %v321_v51 = vmul.f32 %v319_v50, %v317_v47 }
 0x7d8   :  { %v324_v48 = vpop.permute.xlu0 %323 }
 0x7d9   :  { %v326_v49 = vmul.f32 %v324_v48, %v317_v47 }
 0x7db   :  { %328 = vrot.lane.b32.xlu1 %v326_v49, %s876_s25 }
 0x84d   :  { %v329_v52 = vpop.permute.xlu1 %328 }
 0x84e   :  { %v331_v53 = vadd.f32 %v329_v52, %v321_v51 }
 0x850   :  { %759 = vtanh.f32 %v331_v53  ;;  %v387_v19 = vrot.slane %v331_v53, 6 }
 0x856   :  { %v760_v54 = vpop.eup %759 }
 0x857   :  { %334 = vrot.lane.b32.xlu2 %v760_v54, %s875_s2 }
 0x8b1   :  { %v335_v56 = vpop.permute.xlu2 %334 }
 0x8b2   :  { %v337_v57 = vmul.f32 %v335_v56, %v317_v47 }
 0x8b4   :  { %v339_v58 = vrot.slane %v337_v57, 6 }
 0x8b6   :  { %340 = vrot.lane.b32.xlu0 %v339_v58, %s876_s25 }
 0x928   :  { %v341_v59 = vpop.permute.xlu0 %340 }
 0x929   :  { %708 = vmatmul.msk.f32.vlgmr.msrb.gmra.mxu1 %vm126_vm8, %v341_v59 }
 0x9a6   :  { %v361_v62 = vpop.f32.mrf.mxu1 }
 0x9a7   :  { %v364_v63 = vadd.f32 %v361_v62, %v955_v61 }
 0x9a9   :  { %v709_v0 = vmul.f32 -1.442695, %v364_v63 }
 0x9ab   :  { %761 = vpow2.f32 %v709_v0 }
 0x9b1   :  { %v762_v1 = vpop.eup %761 }
 0x9b2   :  { %v369_v3 = vadd.f32 1.0, %v762_v1 }
 0x9b4   :  { %763 = vrcp.f32 %v369_v3  ;;  %v381_v8 = vand.u32 2147483648, %v369_v3  ;;  %v379_v10 = vand.u32 2147483647, %v369_v3  ;;  %vm375_vm7 = vweird.f32 %v369_v3 }
 0x9b5   :  { %765 = vtanh.f32 %v364_v63 }
 0x9b6   :  { %v382_v2 = vor.u32 1.1754944e-38, %v381_v8  ;;  %vm380_vm10 = vcmp.eq.f32.partialorder %v379_v10, 8.507059e+37 }
 0x9ba   :  { %v764_v5 = vpop.eup %763 }
 0x9bb   :  { %v371_v6 = vmul.f32 %v764_v5, %v369_v3  ;;  %vm376_vm0 = vweird.f32 %v764_v5  ;;  %v766_v13 = vpop.eup %765 }
 0x9bc   :  { %vm377_vm9 = vmor %vm375_vm7, %vm376_vm0 }
 0x9bd   :  { %v372_v7 = vsub.f32 1.0, %v371_v6 }
 0x9bf   :  { %v373_v9 = vmul.f32 %v764_v5, %v372_v7 }
 0x9c1   :  { %v374_v11 = vadd.f32 %v764_v5, %v373_v9 }
 0x9c3   :  { %v378_v12 = vsel %vm377_vm9, %v764_v5, %v374_v11  ;;  %vm679_vm9 = vcmask 33792  }
 0x9c4   :  { %v383_v14 = vsel %vm380_vm10, %v382_v2, %v378_v12 }
 0x9c5   :  { %v385_v15 = vsel %vm916_vm4, %v766_v13, %v383_v14 }
 0x9c6   :  { %391 = vrot.lane.b32.xlu1 %v385_v15, %s875_s2  ;;  %v389_v20 = vmul.f32 %v387_v19, %v385_v15 }
 0xa38   :  { %v392_v17 = vpop.permute.xlu1 %391 }
 0xa39   :  { %v394_v18 = vmul.f32 %v392_v17, %v385_v15 }
 0xa3b   :  { %396 = vrot.lane.b32.xlu2 %v394_v18, %s876_s25 }
 0xa95   :  { %v397_v21 = vpop.permute.xlu2 %396 }
 0xa96   :  { %v399_v22 = vadd.f32 %v397_v21, %v389_v20 }
 0xa98   :  { %767 = vtanh.f32 %v399_v22  ;;  %v457_v46 = vrot.slane %v399_v22, 6 }
 0xa9e   :  { %v768_v23 = vpop.eup %767 }
 0xa9f   :  { %402 = vrot.lane.b32.xlu0 %v768_v23, %s875_s2 }
 0xb11   :  { %v403_v24 = vpop.permute.xlu0 %402 }
 0xb12   :  { %v405_v25 = vmul.f32 %v403_v24, %v385_v15 }
 0xb14   :  { %407 = vrot.lane.b32.xlu1 %v405_v25, %s876_s25 }
 0xb86   :  { %v408_v26 = vpop.permute.xlu1 %407 }
 0xb87   :  { %710 = vmatmul.msk.f32.vlgmr.msrb.gmra.mxu2 %vm126_vm8, %v408_v26 }
 0xc0a   :  { %v428_v27 = vpop.f32.mrf.mxu2 }
 0xc0b   :  { %v432_v28 = vrot.slane %v428_v27, 6 }
 0xc0d   :  { %v434_v29 = vadd.f32 %v432_v28, %v955_v61 }
 0xc0f   :  { %v711_v30 = vmul.f32 -1.442695, %v434_v29 }
 0xc11   :  { %769 = vpow2.f32 %v711_v30 }
 0xc17   :  { %v770_v31 = vpop.eup %769 }
 0xc18   :  { %v439_v32 = vadd.f32 1.0, %v770_v31 }
 0xc1a   :  { %771 = vrcp.f32 %v439_v32  ;;  %v451_v36 = vand.u32 2147483648, %v439_v32  ;;  %v449_v38 = vand.u32 2147483647, %v439_v32  ;;  %vm445_vm12 = vweird.f32 %v439_v32 }
 0xc1b   :  { %773 = vtanh.f32 %v434_v29 }
 0xc1c   :  { %v452_v40 = vor.u32 1.1754944e-38, %v451_v36  ;;  %vm450_vm14 = vcmp.eq.f32.partialorder %v449_v38, 8.507059e+37 }
 0xc20   :  { %v772_v33 = vpop.eup %771 }
 0xc21   :  { %v441_v34 = vmul.f32 %v772_v33, %v439_v32  ;;  %vm446_vm11 = vweird.f32 %v772_v33  ;;  %v774_v42 = vpop.eup %773 }
 0xc22   :  { %vm447_vm13 = vmor %vm445_vm12, %vm446_vm11 }
 0xc23   :  { %v442_v35 = vsub.f32 1.0, %v441_v34 }
 0xc25   :  { %v443_v37 = vmul.f32 %v772_v33, %v442_v35 }
 0xc27   :  { %v444_v39 = vadd.f32 %v772_v33, %v443_v37 }
 0xc29   :  { %v448_v41 = vsel %vm447_vm13, %v772_v33, %v444_v39 }
 0xc2a   :  { %v453_v43 = vsel %vm450_vm14, %v452_v40, %v448_v41 }
 0xc2b   :  { %v455_v44 = vsel %vm916_vm4, %v774_v42, %v453_v43 }
 0xc2c   :  { %461 = vrot.lane.b32.xlu2 %v455_v44, %s875_s2  ;;  %v459_v47 = vmul.f32 %v457_v46, %v455_v44  ;;  %v621_v46 = vld [vmem:[#allocation5 + $0x20] sm:$0xff] }
 0xc2d   :  { %645 = vmatpush.msra.mxu1 %v621_v46 }
 0xc86   :  { %v462_v45 = vpop.permute.xlu2 %461 }
 0xc87   :  { %v464_v4 = vmul.f32 %v462_v45, %v455_v44 }
 0xc89   :  { %466 = vrot.lane.b32.xlu0 %v464_v4, %s876_s25 }
 0xcfb   :  { %v467_v48 = vpop.permute.xlu0 %466 }
 0xcfc   :  { %v469_v49 = vadd.f32 %v467_v48, %v459_v47  ;;  %v620_v47 = vld [vmem:[#allocation5 + $0x18] sm:$0xff]  ;;  %v619_v48 = vld [vmem:[#allocation5 + $0x10] sm:$0xff] }
 0xcfd   :  { %646 = vmatpush.msra.mxu1 %v620_v47 }
 0xcfe   :  { %775 = vtanh.f32 %v469_v49  ;;  %v528_v13 = vrot.slane %v469_v49, 6 }
 0xcff   :  { %647 = vmatpush.msra.mxu1 %v619_v48 }
 0xd01   :  { %648 = vmatpush.msra.mxu1 %v618_v16 }
 0xd04   :  { %v776_v50 = vpop.eup %775 }
 0xd05   :  { %472 = vrot.lane.b32.xlu1 %v776_v50, %s875_s2 }
 0xd77   :  { %v473_v51 = vpop.permute.xlu1 %472 }
 0xd78   :  { %v475_v52 = vmul.f32 %v473_v51, %v455_v44 }
 0xd7a   :  { %v477_v53 = vrot.slane %v475_v52, 2  ;;  %v624_v52 = vld [vmem:[#allocation5 + $0x38] sm:$0xff] }
 0xd7b   :  { %673 = vmatpush.msra.mxu2 %v624_v52 }
 0xd7c   :  { %478 = vrot.lane.b32.xlu2 %v477_v53, %s876_s25 }
 0xdd6   :  { %v479_v54 = vpop.permute.xlu2 %478 }
 0xdd7   :  { %712 = vmatmul.msk.f32.vlgmr.msrb.gmra.mxu3 %vm126_vm8, %v479_v54  ;;  %v623_v54 = vld [vmem:[#allocation5 + $0x30] sm:$0xff] }
 0xdd8   :  { %674 = vmatpush.msra.mxu2 %v623_v54 }
 0xe5a   :  { %v499_v55 = vpop.f32.mrf.mxu3 }
 0xe5b   :  { %v503_v56 = vrot.slane %v499_v55, 4  ;;  %v727_v55 = vld [vmem:[#allocation5 + $0x28] ss:$0 sm:$0xff] }
 0xe5d   :  { %v505_v57 = vadd.f32 %v503_v56, %v955_v61 }
 0xe5f   :  { %v713_v58 = vmul.f32 -1.442695, %v505_v57 }
 0xe61   :  { %777 = vpow2.f32 %v713_v58 }
 0xe67   :  { %v778_v59 = vpop.eup %777 }
 0xe68   :  { %v510_v60 = vadd.f32 1.0, %v778_v59  ;;  %v728_v59 = vld [vmem:[#allocation5 + $0x40] ss:$0 sm:$0xff] }
 0xe6a   :  { %779 = vrcp.f32 %v510_v60  ;;  %v522_v1 = vand.u32 2147483648, %v510_v60  ;;  %v520_v5 = vand.u32 2147483647, %v510_v60  ;;  %vm516_vm1 = vweird.f32 %v510_v60 }
 0xe6b   :  { %781 = vtanh.f32 %v505_v57 }
 0xe6c   :  { %v523_v7 = vor.u32 1.1754944e-38, %v522_v1  ;;  %vm521_vm3 = vcmp.eq.f32.partialorder %v520_v5, 8.507059e+37 }
 0xe70   :  { %v780_v62 = vpop.eup %779 }
 0xe71   :  { %v512_v63 = vmul.f32 %v780_v62, %v510_v60  ;;  %vm517_vm15 = vweird.f32 %v780_v62  ;;  %v782_v9 = vpop.eup %781 }
 0xe72   :  { %vm518_vm2 = vmor %vm516_vm1, %vm517_vm15 }
 0xe73   :  { %v513_v0 = vsub.f32 1.0, %v512_v63 }
 0xe75   :  { %v514_v3 = vmul.f32 %v780_v62, %v513_v0 }
 0xe77   :  { %v515_v6 = vadd.f32 %v780_v62, %v514_v3 }
 0xe79   :  { %v519_v8 = vsel %vm518_vm2, %v780_v62, %v515_v6 }
 0xe7a   :  { %v524_v10 = vsel %vm521_vm3, %v523_v7, %v519_v8 }
 0xe7b   :  { %v526_v11 = vsel %vm916_vm4, %v782_v9, %v524_v10 }
 0xe7c   :  { %532 = vrot.lane.b32.xlu0 %v526_v11, %s875_s2  ;;  %v530_v14 = vmul.f32 %v528_v13, %v526_v11 }
 0xeee   :  { %v533_v2 = vpop.permute.xlu0 %532 }
 0xeef   :  { %v535_v12 = vmul.f32 %v533_v2, %v526_v11 }
 0xef1   :  { %537 = vrot.lane.b32.xlu1 %v535_v12, %s876_s25 }
 0xf63   :  { %v538_v15 = vpop.permute.xlu1 %537 }
 0xf64   :  { %v540_v17 = vadd.f32 %v538_v15, %v530_v14 }
 0xf66   :  { %783 = vtanh.f32 %v540_v17  ;;  %v599_v42 = vrot.slane %v540_v17, 6 }
 0xf6c   :  { %v784_v18 = vpop.eup %783 }
 0xf6d   :  { %543 = vrot.lane.b32.xlu2 %v784_v18, %s875_s2 }
 0xfc7   :  { %v544_v19 = vpop.permute.xlu2 %543 }
 0xfc8   :  { %v546_v20 = vmul.f32 %v544_v19, %v526_v11 }
 0xfca   :  { %v548_v21 = vrot.slane %v546_v20, 4 }
 0xfcc   :  { %549 = vrot.lane.b32.xlu0 %v548_v21, %s876_s25 }
0x103e   :  { %v550_v22 = vpop.permute.xlu0 %549 }
0x103f   :  { %714 = vmatmul.msk.f32.vlgmr.msrb.gmra.mxu0 %vm126_vm8, %v550_v22 }
0x10bc   :  { %v570_v23 = vpop.f32.mrf.mxu0 }
0x10bd   :  { %v574_v24 = vrot.slane %v570_v23, 2 }
0x10bf   :  { %v576_v25 = vadd.f32 %v574_v24, %v955_v61 }
0x10c1   :  { %v715_v26 = vmul.f32 -1.442695, %v576_v25 }
0x10c3   :  { %785 = vpow2.f32 %v715_v26 }
0x10c9   :  { %v786_v27 = vpop.eup %785 }
0x10ca   :  { %v581_v28 = vadd.f32 1.0, %v786_v27 }
0x10cc   :  { %787 = vrcp.f32 %v581_v28  ;;  %v593_v32 = vand.u32 2147483648, %v581_v28  ;;  %v591_v34 = vand.u32 2147483647, %v581_v28  ;;  %vm587_vm6 = vweird.f32 %v581_v28 }
0x10cd   :  { %789 = vtanh.f32 %v576_v25 }
0x10ce   :  { %v594_v36 = vor.u32 1.1754944e-38, %v593_v32  ;;  %vm592_vm7 = vcmp.eq.f32.partialorder %v591_v34, 8.507059e+37 }
0x10d2   :  { %v788_v29 = vpop.eup %787 }
0x10d3   :  { %v583_v30 = vmul.f32 %v788_v29, %v581_v28  ;;  %vm588_vm5 = vweird.f32 %v788_v29  ;;  %v790_v61 = vpop.eup %789 }
0x10d4   :  { %vm589_vm0 = vmor %vm587_vm6, %vm588_vm5 }
0x10d5   :  { %v584_v31 = vsub.f32 1.0, %v583_v30 }
0x10d7   :  { %v585_v33 = vmul.f32 %v788_v29, %v584_v31 }
0x10d9   :  { %v586_v35 = vadd.f32 %v788_v29, %v585_v33 }
0x10db   :  { %v590_v37 = vsel %vm589_vm0, %v788_v29, %v586_v35 }
0x10dc   :  { %v595_v38 = vsel %vm592_vm7, %v594_v36, %v590_v37 }
0x10dd   :  { %v597_v39 = vsel %vm916_vm4, %v790_v61, %v595_v38  ;;  %vm655_vm4 = vcmask 130048  }
0x10de   :  { %603 = vrot.lane.b32.xlu1 %v597_v39, %s875_s2  ;;  %v601_v43 = vmul.f32 %v599_v42, %v597_v39 }
0x1150   :  { %v604_v40 = vpop.permute.xlu1 %603 }
0x1151   :  { %v606_v41 = vmul.f32 %v604_v40, %v597_v39 }
0x1153   :  { %608 = vrot.lane.b32.xlu2 %v606_v41, %s876_s25 }
0x11ad   :  { %v609_v44 = vpop.permute.xlu2 %608 }
0x11ae   :  { %v611_v45 = vadd.f32 %v609_v44, %v601_v43 }
0x11b0   :  { %791 = vtanh.f32 %v611_v45 }
0x11b6   :  { %v792_v4 = vpop.eup %791 }
0x11b7   :  { %614 = vrot.lane.b32.xlu0 %v792_v4, %s875_s2 }
0x1229   :  { %v615_v49 = vpop.permute.xlu0 %614 }
0x122a   :  { %v617_v50 = vmul.f32 %v615_v49, %v597_v39 }
0x122c   :  { %v628_v51 = vrot.slane %v617_v50, 6 }
0x122e   :  { %629 = vrot.lane.b32.xlu1 %v628_v51, %s876_s25 }
0x12a0   :  { %v630_v53 = vpop.permute.xlu1 %629 }
0x12a1   :  { %716 = vmatmul.msk.f32.vlgmr.msra.gmra.mxu1 %vm126_vm8, %v630_v53 }
0x131e   :  { %v650_v56 = vpop.f32.mrf.mxu1 }
0x131f   :  { %v651_v57 = vadd.f32 %v727_v55, %v650_v56 }
0x1321   :  { %v653_v58 = vmax.f32 %v651_v57, 0.0 }
0x1323   :  { %717 = vmatmul.msk.f32.vlgmr.msra.gmra.mxu2 %vm655_vm4, %v653_v58 }
0x13a6   :  { %v676_v60 = vpop.f32.mrf.mxu2 }
0x13a7   :  { %v677_v62 = vadd.f32 %v728_v59, %v676_v60 }
0x13a9   :  { %680 = vst.msk [vmem:[#allocation7] sm:$0x3] %vm679_vm9, %v677_v62 }
0x13aa   :  { %691 = dma.vmem_to_hbm [thread:$0]  %s687_s29, 32, %s689_s5, [#allocation4]  }
0x13ab   :  { %869 = dma.done.wait [#allocation4], 32  }
0x13ac   :  { %870 = vsyncadd [#allocation4], 4294967264 }
0x13ad   :  { %696 = vsyncpa [#allocation3], 1 }
0x13ae   :  { %697 = vsyncpa [#allocation6], 1 }
0x13af   :  { %698 = vsyncpa [#allocation4], 1 }

</bundles_post_ra>
